<compile_context>
chip_gen: v7x
topology: tpu7x:2x2x1
jax: 0.10.0
libtpu: 0.0.40
codegen_flags: <defaults>
</compile_context>

<pallas_src>
import math
import functools

import jax
import jax.numpy as jnp
from jax.experimental import pallas as pl
from jax.experimental.pallas import tpu as pltpu

LANE = 128          # lane width; output features zero-padded to this for lane-dense stores
TINY_BATCH = 512    # at/below this, a single no-grid invocation is cheapest
MIN_TILE = 8        # f32 sublane granularity


def expert_policy_kernel(x_ref, w_ref, b_ref, o_ref):
    # x_ref: (tile_b, obs_dim) f32
    # w_ref: (obs_dim, n_pad)  f32   pre-transposed, output features zero-padded
    # b_ref: (1, n_pad)        f32   zero-padded
    # o_ref: (tile_b, n_pad)   f32   lane-dense (n_pad % 128 == 0)
    acc = jnp.dot(x_ref[...], w_ref[...], preferred_element_type=jnp.float32)
    o_ref[...] = jnp.tanh(acc + b_ref[...]).astype(o_ref.dtype)


def pad_params(w, b):
    """One-time parameter prep (off the hot path).

    Takes PyTorch-layout w: (action_dim, obs_dim), b: (action_dim,) and returns
    w_p: (obs_dim, n_pad) (transposed, zero-padded) and b_p: (1, n_pad).
    """
    action_dim, obs_dim = w.shape
    n_pad = max(LANE, ((action_dim + LANE - 1) // LANE) * LANE)
    w_p = jnp.zeros((obs_dim, n_pad), w.dtype).at[:, :action_dim].set(w.T)
    b_p = jnp.zeros((1, n_pad), b.dtype).at[0, :action_dim].set(b)
    return w_p, b_p


def _round_up(x, m):
    return ((x + m - 1) // m) * m


def _cost(b, obs_dim, n_pad):
    return pl.CostEstimate(
        flops=2 * b * obs_dim * n_pad,
        transcendentals=b * n_pad,
        bytes_accessed=4 * (b * obs_dim + n_pad * obs_dim + n_pad + b * n_pad),
    )


@functools.partial(jax.jit, static_argnames=("action_dim", "tile_b"))
def expert_policy_forward(x, w_p, b_p, *, action_dim, tile_b=2048):
    """tanh(x @ W^T + b).  x: (B, obs_dim) f32; w_p/b_p from pad_params."""
    B, obs_dim = x.shape
    n_pad = w_p.shape[1]

    if B <= TINY_BATCH:
        # Tiny batch: single invocation, whole arrays resident in VMEM, no grid overhead.
        out_padded = pl.pallas_call(
            expert_policy_kernel,
            out_shape=jax.ShapeDtypeStruct((B, n_pad), x.dtype),
            in_specs=[
                pl.BlockSpec(memory_space=pltpu.MemorySpace.VMEM),
                pl.BlockSpec(memory_space=pltpu.MemorySpace.VMEM),
                pl.BlockSpec(memory_space=pltpu.MemorySpace.VMEM),
            ],
            out_specs=pl.BlockSpec(memory_space=pltpu.MemorySpace.VMEM),
            cost_estimate=_cost(B, obs_dim, n_pad),
        )(x, w_p, b_p)
    else:
        # Always-tiled cdiv grid; ragged last block is masked by Pallas.  Cap the tile at
        # ceil(B/2) so v7x's 2 TensorCores each get at least one grid step.
        tb = max(MIN_TILE, min(tile_b, _round_up(pl.cdiv(B, 2), MIN_TILE)))
        grid = (pl.cdiv(B, tb),)
        out_padded = pl.pallas_call(
            expert_policy_kernel,
            out_shape=jax.ShapeDtypeStruct((B, n_pad), x.dtype),
            grid=grid,
            in_specs=[
                pl.BlockSpec((tb, obs_dim), lambda i: (i, 0)),
                pl.BlockSpec((obs_dim, n_pad), lambda i: (0, 0)),
                pl.BlockSpec((1, n_pad), lambda i: (0, 0)),
            ],
            out_specs=pl.BlockSpec((tb, n_pad), lambda i: (i, 0)),
            compiler_params=pltpu.CompilerParams(
                dimension_semantics=("parallel",),
            ),
            cost_estimate=_cost(B, obs_dim, n_pad),
        )(x, w_p, b_p)

    # Slice off the lane padding inside the same jit (XLA can fuse with the consumer).
    return out_padded[:, :action_dim]


def init_linear_params(key, obs_dim, action_dim):
    """Deterministic init mirroring torch.nn.Linear's default (uniform +/- 1/sqrt(in))."""
    k_w, k_b = jax.random.split(key)
    bound = 1.0 / math.sqrt(obs_dim)
    w = jax.random.uniform(k_w, (action_dim, obs_dim), jnp.float32, -bound, bound)
    b = jax.random.uniform(k_b, (action_dim,), jnp.float32, -bound, bound)
    return w, b


if __name__ == "__main__":
    key = jax.random.PRNGKey(0)
    k_x, k_p, k_x2, k_x3 = jax.random.split(key, 4)

    batch = 8
    obs_dim = 32
    action_dim = 8

    x = jax.random.normal(k_x, (batch, obs_dim), jnp.float32)
    w, b = init_linear_params(k_p, obs_dim, action_dim)
    w_p, b_p = pad_params(w, b)

    # Tiny-batch (no-grid) path.
    out = expert_policy_forward(x, w_p, b_p, action_dim=action_dim)
    out = jax.block_until_ready(out)
    ref = jnp.tanh(x @ w.T + b)
    assert out.shape == (batch, action_dim)
    assert jnp.allclose(out, ref, atol=1e-5, rtol=1e-5)

    # Tiled path with a ragged (non-divisible) batch — exercises the cdiv grid + masking.
    rag_batch = 600
    x_rag = jax.random.normal(k_x2, (rag_batch, obs_dim), jnp.float32)
    out_rag = expert_policy_forward(x_rag, w_p, b_p, action_dim=action_dim)
    out_rag = jax.block_until_ready(out_rag)
    ref_rag = jnp.tanh(x_rag @ w.T + b)
    assert out_rag.shape == (rag_batch, action_dim)
    assert jnp.allclose(out_rag, ref_rag, atol=1e-5, rtol=1e-5)

    # Tiled path with a larger divisible batch (multiple full tiles).
    big_batch = 4096
    x_big = jax.random.normal(k_x3, (big_batch, obs_dim), jnp.float32)
    out_big = expert_policy_forward(x_big, w_p, b_p, action_dim=action_dim)
    out_big = jax.block_until_ready(out_big)
    ref_big = jnp.tanh(x_big @ w.T + b)
    assert out_big.shape == (big_batch, action_dim)
    assert jnp.allclose(out_big, ref_big, atol=1e-5, rtol=1e-5)

    print("KERNEL_OK")
</pallas_src>

<mosaic_0001>
module attributes {stable_mosaic.version = 11 : i64} {
  func.func @expert_policy_kernel(%arg0: memref<8x32xf32, #tpu.memory_space<vmem>>, %arg1: memref<32x128xf32, #tpu.memory_space<vmem>>, %arg2: memref<1x128xf32, #tpu.memory_space<vmem>>, %arg3: memref<8x128xf32, #tpu.memory_space<vmem>>) attributes {dimension_semantics = [], scalar_prefetch = 0 : i64, scratch_operands = 0 : i64, tpu.core_type = #tpu.core_type<tc>} {
    %c0 = arith.constant 0 : index
    %c0_0 = arith.constant 0 : index
    %0 = vector.load %arg0[%c0, %c0_0] : memref<8x32xf32, #tpu.memory_space<vmem>>, vector<8x32xf32>
    %c0_1 = arith.constant 0 : index
    %c0_2 = arith.constant 0 : index
    %1 = vector.load %arg1[%c0_1, %c0_2] : memref<32x128xf32, #tpu.memory_space<vmem>>, vector<32x128xf32>
    %cst = arith.constant dense<0.000000e+00> : vector<8x128xf32>
    %2 = tpu.matmul %0, %1, %cst {dimension_numbers = #tpu.dot_dimension_numbers<[1], [0], [0], [1], [0, 0, 1, 1], [], []>} : vector<8x32xf32>, vector<32x128xf32>, vector<8x128xf32> -> vector<8x128xf32>
    %c0_3 = arith.constant 0 : index
    %c0_4 = arith.constant 0 : index
    %3 = vector.load %arg2[%c0_3, %c0_4] : memref<1x128xf32, #tpu.memory_space<vmem>>, vector<1x128xf32>
    %4 = vector.broadcast %3 : vector<1x128xf32> to vector<8x128xf32>
    %5 = arith.addf %2, %4 : vector<8x128xf32>
    %6 = math.tanh %5 : vector<8x128xf32>
    %c0_5 = arith.constant 0 : index
    %c0_6 = arith.constant 0 : index
    %7 = vector.load %arg3[%c0_5, %c0_6] : memref<8x128xf32, #tpu.memory_space<vmem>>, vector<8x128xf32>
    tpu.vector_store %arg3[%c0_5, %c0_6], %6 {strides = array<i32>} : memref<8x128xf32, #tpu.memory_space<vmem>>, vector<8x128xf32>,
    return
  }
}

</mosaic_0001>

<bundles_post_ra>
// kernel: expert_policy_forward.1
= control target key start
LH: loop header
LB: loop body
LE: loop exit
PB: predicated region body
PF: predicated region fallthrough
CT: control target
= control target key end

     0   :  { %8 = vsyncpa [#allocation3], 0  ;;  %s325_s0 = inlined_call_operand.hbm [shape: f32[8,32], index: 0, kind: input, shape index: {}]   ;;  %s326_s1 = inlined_call_operand.hbm [shape: f32[32,128], index: 1, kind: input, shape index: {}]   ;;  %s327_s2 = inlined_call_operand.vmem [shape: f32[1,128], index: 2, kind: input, shape index: {}]   ;;  %s328_s3 = inlined_call_operand.hbm [shape: f32[8,128], index: 3, kind: output, shape index: {}]  }
   0x1   :  { %9 = vsyncpa [#allocation6], 0 }
   0x2   :  { %10 = vsyncpa [#allocation4], 0  ;;  %s251_s12 = smov [#allocation2]   ;;  %s252_s14 = smov [#allocation5]  }
   0x3   :  { %s17_s13 = sshll.u32 %s251_s12, 4  ;;  %s26_s15 = sshll.u32 %s252_s14, 4  ;;  %s18_s13 = int_to_ptr.vmem [resolvable:$true] %s17_s13  ;;  %s279_s15 = int_to_ptr.vmem [resolvable:$true] %s26_s15 }
   0x4   :  { %s179_s18 = scalar_lea.hbm %s325_s0, 128 }
   0x5   :  { %p180_p0 = scmp.ne.s32.totalorder %s325_s0, %s179_s18  ;;  %p183_p1 = scmp.lt.u32.totalorder %s179_s18, %s325_s0 }
   0x7   :  { %p185_p2 = pnand %p183_p1, %p180_p0 }
   0x9   :  { %188 = shalt.err (!%p185_p2)
}
   0xa   :  { %s189_s23 = scalar_lea.vmem %s18_s13, 128  ;;  %p194_p4 = scmp.lt.s32.totalorder %s18_s13, %s18_s13 }
   0xb   :  { %p190_p3 = scmp.ne.s32.totalorder %s18_s13, %s189_s23  ;;  %p195_p5 = scmp.lt.s32.totalorder %s189_s23, %s189_s23 }
   0xd   :  { %p196_p6 = por %p195_p5, %p194_p4 }
   0xf   :  { %p197_p7 = pnand %p196_p6, %p190_p3 }
  0x11   :  { %200 = shalt.err (!%p197_p7)
}
  0x12   :  { %20 = dma.hbm_to_vmem [thread:$0]  %s325_s0, 128, %s18_s13, [#allocation3]  }
  0x13   :  { %s201_s28 = scalar_lea.hbm %s326_s1, 512 }
  0x14   :  { %p202_p8 = scmp.ne.s32.totalorder %s326_s1, %s201_s28  ;;  %p205_p9 = scmp.lt.u32.totalorder %s201_s28, %s326_s1 }
  0x16   :  { %p207_p10 = pnand %p205_p9, %p202_p8 }
  0x18   :  { %210 = shalt.err (!%p207_p10)
}
  0x19   :  { %s211_s6 = scalar_lea.vmem %s279_s15, 512  ;;  %p216_p12 = scmp.lt.s32.totalorder %s279_s15, %s279_s15 }
  0x1a   :  { %p212_p11 = scmp.ne.s32.totalorder %s279_s15, %s211_s6  ;;  %p217_p13 = scmp.lt.s32.totalorder %s211_s6, %s211_s6 }
  0x1c   :  { %p218_p0 = por %p217_p13, %p216_p12 }
  0x1e   :  { %p219_p1 = pnand %p218_p0, %p212_p11 }
  0x20   :  { %222 = shalt.err (!%p219_p1)
}
  0x21   :  { %s253_s0 = smov 128   ;;  %s254_s7 = smov 8  }
  0x22   :  { %32 = dma.hbm_to_vmem [thread:$0]  %s326_s1, 512, %s279_s15, [#allocation6], %s253_s0, %s253_s0, %s254_s7  }
  0x23   :  { %245 = dma.done.wait [#allocation3], 128  }
  0x24   :  { %246 = vsyncadd [#allocation3], 4294967168 }
  0x25   :  { %247 = dma.done.wait [#allocation6], 512  }
  0x26   :  { %248 = vsyncadd [#allocation6], 4294966784  ;;  %v255_v0 = vmov 0.0|0.0   ;;  %vm256_vm0 = vmmov 0   ;;  %v257_v1 = vmov 0.0   ;;  %v42_v2 = vld [vmem:[#allocation5] sm:$0xff] }
  0x27   :  { %163 = vmatprep.subr.bf16.mxu0 %v255_v0  ;;  %160 = vmatprep.mubr.msk.f32.mxu0 %vm256_vm0, %v257_v1  ;;  %v43_v3 = vld [vmem:[#allocation5 + $0x8] sm:$0xff]  ;;  %v44_v4 = vld [vmem:[#allocation5 + $0x10] sm:$0xff]  ;;  %v45_v6 = vld [vmem:[#allocation5 + $0x18] sm:$0xff]  ;;  %vm53_vm1 = vcmask 261120   ;;  %s258_s11 = smov [#allocation7]  }
  0x28   :  { %v164_v5 = vpack.c.bf16 %v43_v3, %v42_v2  ;;  %v167_v7 = vpack.c.bf16 %v45_v6, %v44_v4  ;;  %v41_v8 = vld [vmem:[#allocation2] sm:$0xff]  ;;  %s135_s12 = sshll.u32 %s258_s11, 4  ;;  %s136_s12 = int_to_ptr.vmem [resolvable:$true] %s135_s12 }
  0x29   :  { %v145_v9 = vld [vmem:[%s327_s2] ss:$0 sm:$0xff]  ;;  %s223_s13 = scalar_lea.vmem %s136_s12, 128  ;;  %p228_p3 = scmp.lt.s32.totalorder %s136_s12, %s136_s12 }
  0x2a   :  { %165 = vmatpush3.bf16.msra.mxu0 %v164_v5  ;;  %p224_p2 = scmp.ne.s32.totalorder %s136_s12, %s223_s13  ;;  %p229_p4 = scmp.lt.s32.totalorder %s223_s13, %s223_s13 }
  0x2b   :  { %166 = vmatprep.subr.bf16.mxu0 %v255_v0 }
  0x2c   :  { %p230_p5 = por %p229_p4, %p228_p3 }
  0x2e   :  { %168 = vmatpush3.bf16.msra.mxu0 %v167_v7  ;;  %p231_p6 = pnand %p230_p5, %p224_p2 }
  0x31   :  { %161 = vmatmul.mubr.msk.f32.vlgmr.msra.gmra.mrb[0].mxu0 %vm53_vm1, %v41_v8 }
 0x104   :  { %v123_v10 = vpop.f32.mrb[0].mxu0 }
 0x105   :  { %v124_v11 = vadd.f32 %v145_v9, %v123_v10  ;;  %v162_v12 = vpop.f32.mrb[1].mxu0 }
 0x107   :  { %177 = vtanh.f32 %v124_v11 }
 0x111   :  { %v178_v13 = vpop.eup %177 }
 0x112   :  { %128 = vst [vmem:[#allocation7] sm:$0xff] %v178_v13 }
 0x113   :  { %234 = shalt.err (!%p231_p6)
}
 0x114   :  { %s235_s2 = scalar_lea.hbm %s328_s3, 128 }
 0x115   :  { %p236_p7 = scmp.ne.s32.totalorder %s328_s3, %s235_s2  ;;  %p239_p8 = scmp.lt.u32.totalorder %s235_s2, %s328_s3 }
 0x117   :  { %p241_p9 = pnand %p239_p8, %p236_p7 }
 0x119   :  { %244 = shalt.err (!%p241_p9)
}
 0x11a   :  { %138 = dma.vmem_to_hbm [thread:$0]  %s136_s12, 128, %s328_s3, [#allocation4]  }
 0x11b   :  { %249 = dma.done.wait [#allocation4], 128  }
 0x11c   :  { %250 = vsyncadd [#allocation4], 4294967168 }
 0x11d   :  { %142 = vsyncpa [#allocation3], 1 }
 0x11e   :  { %143 = vsyncpa [#allocation6], 1 }
 0x11f   :  { %144 = vsyncpa [#allocation4], 1 }

</bundles_post_ra>
